<compile_context>
chip_gen: v5e
topology: v5e:2x2
jax: 0.10.0
libtpu: 0.0.40
codegen_flags: <defaults>
</compile_context>

<pallas_src>
import math
import functools

import jax
import jax.numpy as jnp
from jax import lax
from jax.experimental import pallas as pl
from jax.experimental.pallas import tpu as pltpu


def _self_attention_kernel(x_ref, wqkv_ref, bqkv_ref, wproj_ref, bproj_ref,
                           mask_ref, o_ref, *, n_head):
    """Single-invocation kernel: whole batch, all heads.

    x_ref    : (B, T, C)        bf16
    wqkv_ref : (3*nh, C, hd)    bf16  head-major QKV weights (scale folded into Q)
    bqkv_ref : (3*nh, 1, hd)    f32   head-major QKV bias    (scale folded into Q)
    wproj_ref: (nh, hd, C)      bf16  head-major output-projection weights
    bproj_ref: (1, C)           f32
    mask_ref : (T, T)           f32   additive causal bias (0 keep / -1e30 drop)
    o_ref    : (B, T, C)        f32
    """
    x = x_ref[...]                                   # (B, T, C) bf16
    b, t, c = x.shape
    hd = c // n_head
    nh3 = 3 * n_head
    nb = n_head * b                                  # combined (head, batch) size

    # ---- QKV projection: one batched MXU matmul over every (q|k|v, head, batch).
    # Only outer-dim broadcasts / reshapes (no relayouts, no lane slicing).
    xb = jnp.broadcast_to(x[None], (nh3, b, t, c)).reshape(nh3 * b, t, c)
    wb = jnp.broadcast_to(wqkv_ref[...][:, None], (nh3, b, c, hd)).reshape(nh3 * b, c, hd)
    bb = jnp.broadcast_to(bqkv_ref[...][:, None], (nh3, b, 1, hd)).reshape(nh3 * b, 1, hd)
    qkv = lax.dot_general(
        xb, wb, dimension_numbers=(((2,), (1,)), ((0,), (0,))),
        preferred_element_type=jnp.float32) + bb     # (3*nh*B, T, hd) f32

    q = qkv[0 * nb:1 * nb]                           # (nh*B, T, hd); scale pre-folded
    k = qkv[1 * nb:2 * nb]
    v = qkv[2 * nb:3 * nb]

    # ---- scores: contract head_dim of both operands directly (no k.T transpose).
    s = lax.dot_general(
        q, k, dimension_numbers=(((2,), (2,)), ((0,), (0,))),
        preferred_element_type=jnp.float32)          # (nh*B, T, T) f32
    s = s + mask_ref[...]                            # additive causal bias

    # ---- numerically-stable softmax over keys (f32); reciprocal on the EUP.
    s = s - jnp.max(s, axis=-1, keepdims=True)
    p = jnp.exp(s)
    p = p * pl.reciprocal(jnp.sum(p, axis=-1, keepdims=True), approx=True)

    # ---- attention-weighted values.
    y = lax.dot_general(
        p, v, dimension_numbers=(((2,), (1,)), ((0,), (0,))),
        preferred_element_type=jnp.float32)          # (nh*B, T, hd) f32

    # ---- output projection per (head, batch), then reduce over heads.
    wpb = jnp.broadcast_to(wproj_ref[...][:, None], (n_head, b, hd, c)).reshape(nb, hd, c)
    z = lax.dot_general(
        y.astype(jnp.bfloat16), wpb,
        dimension_numbers=(((2,), (1,)), ((0,), (0,))),
        preferred_element_type=jnp.float32)          # (nh*B, T, C) f32
    out = jnp.sum(z.reshape(n_head, b, t, c), axis=0)        # (B, T, C)
    o_ref[...] = (out + bproj_ref[...]).astype(o_ref.dtype)


def prepare_params(w_attn, b_attn, w_proj, b_proj, n_head):
    """One-time weight prep: PyTorch [out,in] -> head-major [in,out], fold the
    1/sqrt(head_dim) scale into the Q projection, cast MXU operands to bf16."""
    three_c, c = w_attn.shape
    assert three_c == 3 * c and c % n_head == 0
    hd = c // n_head
    scale = 1.0 / math.sqrt(hd)

    # (3C, C) -> (3*nh, hd, C) -> (3*nh, C, hd): group g = (q|k|v, head) slab.
    wqkv = jnp.transpose(w_attn.reshape(3 * n_head, hd, c), (0, 2, 1))
    bqkv = b_attn.reshape(3 * n_head, 1, hd)
    qscale = jnp.concatenate(
        [jnp.full((n_head, 1, 1), scale, jnp.float32),
         jnp.ones((2 * n_head, 1, 1), jnp.float32)], axis=0)
    wqkv = wqkv * qscale
    bqkv = bqkv * qscale

    # c_proj: y_cat @ w_proj.T == sum_h y_h @ (w_proj.T)[h*hd:(h+1)*hd, :]
    wproj = jnp.transpose(w_proj).reshape(n_head, hd, c)
    bproj = b_proj.reshape(1, c)

    return (wqkv.astype(jnp.bfloat16), bqkv.astype(jnp.float32),
            wproj.astype(jnp.bfloat16), bproj.astype(jnp.float32))


def self_attention(x, params, n_head):
    """x: (B, T, C) f32; params from prepare_params(). Returns (B, T, C) f32."""
    b, t, c = x.shape
    hd = c // n_head
    wqkv, bqkv, wproj, bproj = params

    # Additive causal bias, hoisted out of the kernel.
    row = lax.broadcasted_iota(jnp.int32, (t, t), 0)
    col = lax.broadcasted_iota(jnp.int32, (t, t), 1)
    mask = jnp.where(row >= col, 0.0, -1e30).astype(jnp.float32)

    kernel = functools.partial(_self_attention_kernel, n_head=n_head)

    return pl.pallas_call(
        kernel,
        out_shape=jax.ShapeDtypeStruct((b, t, c), jnp.float32),
        grid_spec=pl.GridSpec(
            grid=(1,),  # single fused step; the whole problem is a few KB of VMEM
            in_specs=[
                pl.BlockSpec((b, t, c), lambda i: (0, 0, 0)),
                pl.BlockSpec((3 * n_head, c, hd), lambda i: (0, 0, 0)),
                pl.BlockSpec((3 * n_head, 1, hd), lambda i: (0, 0, 0)),
                pl.BlockSpec((n_head, hd, c), lambda i: (0, 0, 0)),
                pl.BlockSpec((1, c), lambda i: (0, 0)),
                pl.BlockSpec((t, t), lambda i: (0, 0)),
            ],
            out_specs=pl.BlockSpec((b, t, c), lambda i: (0, 0, 0)),
        ),
        compiler_params=pltpu.CompilerParams(
            dimension_semantics=("arbitrary",)),
    )(x.astype(jnp.bfloat16), wqkv, bqkv, wproj, bproj, mask)


def self_attention_ref(x, w_attn, b_attn, w_proj, b_proj, n_head):
    """Pure-JAX reference mirroring the PyTorch forward (eval, no kv cache)."""
    b, t, c = x.shape
    hd = c // n_head
    qkv = jnp.einsum('btc,oc->bto', x, w_attn) + b_attn
    q, k, v = jnp.split(qkv, 3, axis=-1)

    def heads(z):  # (B, T, C) -> (B, nh, T, hd)
        return z.reshape(b, t, n_head, hd).transpose(0, 2, 1, 3)

    q, k, v = heads(q), heads(k), heads(v)
    att = jnp.einsum('bhqd,bhkd->bhqk', q, k) / math.sqrt(hd)
    causal = jnp.tril(jnp.ones((t, t), dtype=bool))
    att = jnp.where(causal, att, -jnp.inf)
    att = jax.nn.softmax(att, axis=-1)
    y = jnp.einsum('bhqk,bhkd->bhqd', att, v)
    y = y.transpose(0, 2, 1, 3).reshape(b, t, c)
    return jnp.einsum('btc,oc->bto', y, w_proj) + b_proj


if __name__ == "__main__":
    # Config: n_embd=32, n_head=4, block_size=8, bias=True, dropout=0 (eval)
    B, T, C, n_head = 2, 8, 32, 4

    key = jax.random.PRNGKey(0)
    kx, k1, k2, k3, k4 = jax.random.split(key, 5)

    x = jax.random.normal(kx, (B, T, C), dtype=jnp.float32)
    w_attn = jax.random.normal(k1, (3 * C, C), dtype=jnp.float32) * (1.0 / math.sqrt(C))
    b_attn = jax.random.normal(k2, (3 * C,), dtype=jnp.float32) * 0.02
    w_proj = jax.random.normal(k3, (C, C), dtype=jnp.float32) * (1.0 / math.sqrt(C))
    b_proj = jax.random.normal(k4, (C,), dtype=jnp.float32) * 0.02

    params = prepare_params(w_attn, b_attn, w_proj, b_proj, n_head)
    y = self_attention(x, params, n_head)
    y = jax.block_until_ready(y)
    assert y.shape == (B, T, C)

    # Fair reference: apply the same bf16 rounding to the MXU operands
    # (input and projection weights); everything else stays f32 — matching the
    # kernel's f32 accumulation / f32 softmax.
    bf = lambda a: a.astype(jnp.bfloat16).astype(jnp.float32)
    y_ref = self_attention_ref(bf(x), bf(w_attn), b_attn, bf(w_proj), b_proj, n_head)
    max_diff = float(jnp.max(jnp.abs(y - y_ref)))
    assert jnp.allclose(y, y_ref, rtol=2.5e-2, atol=2.5e-2), (
        "mismatch vs reference: max abs diff = %f" % max_diff)

    print("KERNEL_OK")
</pallas_src>

<mosaic_0001>
module attributes {stable_mosaic.version = 11 : i64} {
  func.func @_self_attention_kernel(%arg0: i32, %arg1: memref<2x8x32xbf16, #tpu.memory_space<vmem>>, %arg2: memref<12x32x8xbf16, #tpu.memory_space<vmem>>, %arg3: memref<12x1x8xf32, #tpu.memory_space<vmem>>, %arg4: memref<4x8x32xbf16, #tpu.memory_space<vmem>>, %arg5: memref<1x32xf32, #tpu.memory_space<vmem>>, %arg6: memref<8x8xf32, #tpu.memory_space<vmem>>, %arg7: memref<2x8x32xf32, #tpu.memory_space<vmem>>) attributes {dimension_semantics = [#tpu.dimension_semantics<arbitrary>], iteration_bounds = array<i64: 1>, scalar_prefetch = 0 : i64, scratch_operands = 0 : i64, tpu.core_type = #tpu.core_type<tc>, window_params = [{pipeline_mode = #tpu.pipeline_mode<synchronous>, transform_indices = @transform_0, window_bounds = array<i64: 2, 8, 32>}, {pipeline_mode = #tpu.pipeline_mode<synchronous>, transform_indices = @transform_1, window_bounds = array<i64: 12, 32, 8>}, {pipeline_mode = #tpu.pipeline_mode<synchronous>, transform_indices = @transform_2, window_bounds = array<i64: 12, 1, 8>}, {pipeline_mode = #tpu.pipeline_mode<synchronous>, transform_indices = @transform_3, window_bounds = array<i64: 4, 8, 32>}, {pipeline_mode = #tpu.pipeline_mode<synchronous>, transform_indices = @transform_4, window_bounds = array<i64: 1, 32>}, {pipeline_mode = #tpu.pipeline_mode<synchronous>, transform_indices = @transform_5, window_bounds = array<i64: 8, 8>}, {pipeline_mode = #tpu.pipeline_mode<synchronous>, transform_indices = @transform_6, window_bounds = array<i64: 2, 8, 32>}]} {
    %c0 = arith.constant 0 : index
    %c0_0 = arith.constant 0 : index
    %c0_1 = arith.constant 0 : index
    %0 = vector.load %arg1[%c0, %c0_0, %c0_1] : memref<2x8x32xbf16, #tpu.memory_space<vmem>>, vector<2x8x32xbf16>
    %1 = vector.shape_cast %0 : vector<2x8x32xbf16> to vector<1x2x8x32xbf16>
    %2 = vector.shape_cast %1 : vector<1x2x8x32xbf16> to vector<1x2x8x32xbf16>
    %3 = vector.broadcast %2 : vector<1x2x8x32xbf16> to vector<12x2x8x32xbf16>
    %4 = vector.shape_cast %3 : vector<12x2x8x32xbf16> to vector<24x8x32xbf16>
    %c0_2 = arith.constant 0 : index
    %c0_3 = arith.constant 0 : index
    %c0_4 = arith.constant 0 : index
    %5 = vector.load %arg2[%c0_2, %c0_3, %c0_4] : memref<12x32x8xbf16, #tpu.memory_space<vmem>>, vector<12x32x8xbf16>
    %6 = vector.shape_cast %5 : vector<12x32x8xbf16> to vector<12x1x32x8xbf16>
    %7 = vector.shape_cast %6 : vector<12x1x32x8xbf16> to vector<12x1x32x8xbf16>
    %8 = vector.broadcast %7 : vector<12x1x32x8xbf16> to vector<12x2x32x8xbf16>
    %9 = vector.shape_cast %8 : vector<12x2x32x8xbf16> to vector<24x32x8xbf16>
    %c0_5 = arith.constant 0 : index
    %c0_6 = arith.constant 0 : index
    %c0_7 = arith.constant 0 : index
    %10 = vector.load %arg3[%c0_5, %c0_6, %c0_7] : memref<12x1x8xf32, #tpu.memory_space<vmem>>, vector<12x1x8xf32>
    %11 = vector.shape_cast %10 : vector<12x1x8xf32> to vector<12x1x1x8xf32>
    %12 = vector.shape_cast %11 : vector<12x1x1x8xf32> to vector<12x1x1x8xf32>
    %13 = vector.broadcast %12 : vector<12x1x1x8xf32> to vector<12x2x1x8xf32>
    %14 = vector.shape_cast %13 : vector<12x2x1x8xf32> to vector<24x1x8xf32>
    %cst = arith.constant dense<0.000000e+00> : vector<24x8x8xf32>
    %15 = tpu.matmul %4, %9, %cst {dimension_numbers = #tpu.dot_dimension_numbers<[2], [1], [1], [2], [0, 0, 0, 1, 1, 2], [0], [0]>} : vector<24x8x32xbf16>, vector<24x32x8xbf16>, vector<24x8x8xf32> -> vector<24x8x8xf32>
    %16 = vector.broadcast %14 : vector<24x1x8xf32> to vector<24x8x8xf32>
    %17 = arith.addf %15, %16 : vector<24x8x8xf32>
    %18 = vector.extract_strided_slice %17 {offsets = [0, 0, 0], sizes = [8, 8, 8], strides = [1, 1, 1]} : vector<24x8x8xf32> to vector<8x8x8xf32>
    %19 = vector.extract_strided_slice %17 {offsets = [8, 0, 0], sizes = [8, 8, 8], strides = [1, 1, 1]} : vector<24x8x8xf32> to vector<8x8x8xf32>
    %20 = vector.extract_strided_slice %17 {offsets = [16, 0, 0], sizes = [8, 8, 8], strides = [1, 1, 1]} : vector<24x8x8xf32> to vector<8x8x8xf32>
    %cst_8 = arith.constant dense<0.000000e+00> : vector<8x8x8xf32>
    %21 = tpu.matmul %18, %19, %cst_8 {dimension_numbers = #tpu.dot_dimension_numbers<[2], [2], [1], [1], [0, 0, 0, 1, 1, 1], [0], [0]>} : vector<8x8x8xf32>, vector<8x8x8xf32>, vector<8x8x8xf32> -> vector<8x8x8xf32>
    %c0_9 = arith.constant 0 : index
    %c0_10 = arith.constant 0 : index
    %22 = vector.load %arg6[%c0_9, %c0_10] : memref<8x8xf32, #tpu.memory_space<vmem>>, vector<8x8xf32>
    %23 = vector.shape_cast %22 : vector<8x8xf32> to vector<1x8x8xf32>
    %24 = vector.broadcast %23 : vector<1x8x8xf32> to vector<8x8x8xf32>
    %25 = arith.addf %21, %24 : vector<8x8x8xf32>
    %cst_11 = arith.constant dense<0xFF800000> : vector<8x8xf32>
    %26 = vector.multi_reduction <maximumf>, %25, %cst_11 [2] : vector<8x8x8xf32> to vector<8x8xf32>
    %27 = vector.shape_cast %26 : vector<8x8xf32> to vector<8x8x1xf32>
    %28 = vector.broadcast %27 : vector<8x8x1xf32> to vector<8x8x8xf32>
    %29 = arith.subf %25, %28 : vector<8x8x8xf32>
    %30 = math.exp %29 : vector<8x8x8xf32>
    %cst_12 = arith.constant dense<0.000000e+00> : vector<8x8xf32>
    %31 = vector.multi_reduction <add>, %30, %cst_12 [2] : vector<8x8x8xf32> to vector<8x8xf32>
    %32 = vector.shape_cast %31 : vector<8x8xf32> to vector<8x8x1xf32>
    %33 = tpu.reciprocal %32 {approx = true} : vector<8x8x1xf32> -> vector<8x8x1xf32>
    %34 = vector.broadcast %33 : vector<8x8x1xf32> to vector<8x8x8xf32>
    %35 = arith.mulf %30, %34 : vector<8x8x8xf32>
    %cst_13 = arith.constant dense<0.000000e+00> : vector<8x8x8xf32>
    %36 = tpu.matmul %35, %20, %cst_13 {dimension_numbers = #tpu.dot_dimension_numbers<[2], [1], [1], [2], [0, 0, 0, 1, 1, 2], [0], [0]>} : vector<8x8x8xf32>, vector<8x8x8xf32>, vector<8x8x8xf32> -> vector<8x8x8xf32>
    %c0_14 = arith.constant 0 : index
    %c0_15 = arith.constant 0 : index
    %c0_16 = arith.constant 0 : index
    %37 = vector.load %arg4[%c0_14, %c0_15, %c0_16] : memref<4x8x32xbf16, #tpu.memory_space<vmem>>, vector<4x8x32xbf16>
    %38 = vector.shape_cast %37 : vector<4x8x32xbf16> to vector<4x1x8x32xbf16>
    %39 = vector.shape_cast %38 : vector<4x1x8x32xbf16> to vector<4x1x8x32xbf16>
    %40 = vector.broadcast %39 : vector<4x1x8x32xbf16> to vector<4x2x8x32xbf16>
    %41 = vector.shape_cast %40 : vector<4x2x8x32xbf16> to vector<8x8x32xbf16>
    %42 = arith.truncf %36 : vector<8x8x8xf32> to vector<8x8x8xbf16>
    %cst_17 = arith.constant dense<0.000000e+00> : vector<8x8x32xf32>
    %43 = tpu.matmul %42, %41, %cst_17 {dimension_numbers = #tpu.dot_dimension_numbers<[2], [1], [1], [2], [0, 0, 0, 1, 1, 2], [0], [0]>} : vector<8x8x8xbf16>, vector<8x8x32xbf16>, vector<8x8x32xf32> -> vector<8x8x32xf32>
    %44 = vector.shape_cast %43 : vector<8x8x32xf32> to vector<4x2x8x32xf32>
    %cst_18 = arith.constant dense<0.000000e+00> : vector<2x8x32xf32>
    %45 = vector.multi_reduction <add>, %44, %cst_18 [0] : vector<4x2x8x32xf32> to vector<2x8x32xf32>
    %c0_19 = arith.constant 0 : index
    %c0_20 = arith.constant 0 : index
    %46 = vector.load %arg5[%c0_19, %c0_20] : memref<1x32xf32, #tpu.memory_space<vmem>>, vector<1x32xf32>
    %47 = vector.shape_cast %46 : vector<1x32xf32> to vector<1x1x32xf32>
    %48 = vector.broadcast %47 : vector<1x1x32xf32> to vector<2x8x32xf32>
    %49 = arith.addf %45, %48 : vector<2x8x32xf32>
    %c0_21 = arith.constant 0 : index
    %c0_22 = arith.constant 0 : index
    %c0_23 = arith.constant 0 : index
    %50 = vector.load %arg7[%c0_21, %c0_22, %c0_23] : memref<2x8x32xf32, #tpu.memory_space<vmem>>, vector<2x8x32xf32>
    tpu.vector_store %arg7[%c0_21, %c0_22, %c0_23], %49 {strides = array<i32>} : memref<2x8x32xf32, #tpu.memory_space<vmem>>, vector<2x8x32xf32>,
    return
  }
  func.func @transform_0(%arg0: i32) -> (i32, i32, i32) {
    %c0_i32 = arith.constant 0 : i32
    %c0_i32_0 = arith.constant 0 : i32
    %c0_i32_1 = arith.constant 0 : i32
    %c0_i32_2 = arith.constant 0 : i32
    return %c0_i32, %c0_i32_0, %c0_i32_1 : i32, i32, i32
  }
  func.func @transform_1(%arg0: i32) -> (i32, i32, i32) {
    %c0_i32 = arith.constant 0 : i32
    %c0_i32_0 = arith.constant 0 : i32
    %c0_i32_1 = arith.constant 0 : i32
    %c0_i32_2 = arith.constant 0 : i32
    return %c0_i32, %c0_i32_0, %c0_i32_1 : i32, i32, i32
  }
  func.func @transform_2(%arg0: i32) -> (i32, i32, i32) {
    %c0_i32 = arith.constant 0 : i32
    %c0_i32_0 = arith.constant 0 : i32
    %c0_i32_1 = arith.constant 0 : i32
    %c0_i32_2 = arith.constant 0 : i32
    return %c0_i32, %c0_i32_0, %c0_i32_1 : i32, i32, i32
  }
  func.func @transform_3(%arg0: i32) -> (i32, i32, i32) {
    %c0_i32 = arith.constant 0 : i32
    %c0_i32_0 = arith.constant 0 : i32
    %c0_i32_1 = arith.constant 0 : i32
    %c0_i32_2 = arith.constant 0 : i32
    return %c0_i32, %c0_i32_0, %c0_i32_1 : i32, i32, i32
  }
  func.func @transform_4(%arg0: i32) -> (i32, i32) {
    %c0_i32 = arith.constant 0 : i32
    %c0_i32_0 = arith.constant 0 : i32
    %c0_i32_1 = arith.constant 0 : i32
    return %c0_i32, %c0_i32_0 : i32, i32
  }
  func.func @transform_5(%arg0: i32) -> (i32, i32) {
    %c0_i32 = arith.constant 0 : i32
    %c0_i32_0 = arith.constant 0 : i32
    %c0_i32_1 = arith.constant 0 : i32
    return %c0_i32, %c0_i32_0 : i32, i32
  }
  func.func @transform_6(%arg0: i32) -> (i32, i32, i32) {
    %c0_i32 = arith.constant 0 : i32
    %c0_i32_0 = arith.constant 0 : i32
    %c0_i32_1 = arith.constant 0 : i32
    %c0_i32_2 = arith.constant 0 : i32
    return %c0_i32, %c0_i32_0, %c0_i32_1 : i32, i32, i32
  }
}

</mosaic_0001>

<bundles_post_ra>
// kernel: tpu_custom_call.1
= control target key start
LH: loop header
LB: loop body
LE: loop exit
PB: predicated region body
PF: predicated region fallthrough
CT: control target
= control target key end

     0   :  { %vm135_vm0 = vcmask 261120   ;;  %s1798_s0 = inlined_call_operand.vmem [shape: bf16[2,8,32], index: 0, kind: input, shape index: {}]   ;;  %s1799_s1 = inlined_call_operand.vmem [shape: bf16[12,32,8], index: 1, kind: input, shape index: {}]   ;;  %s1800_s2 = inlined_call_operand.vmem [shape: f32[12,1,8], index: 2, kind: input, shape index: {}]   ;;  %s1801_s3 = inlined_call_operand.vmem [shape: bf16[4,8,32], index: 3, kind: input, shape index: {}]   ;;  %s1802_s4 = inlined_call_operand.vmem [shape: f32[1,32], index: 4, kind: input, shape index: {}]   ;;  %s1803_s5 = inlined_call_operand.vmem [shape: f32[8,8], index: 5, kind: input, shape index: {}]   ;;  %s1804_s6 = inlined_call_operand.hbm [shape: f32[2,8,32], index: 6, kind: output, shape index: {}]  }
   0x1   :  { %v1414_v0 = vld [vmem:[%s1799_s1 + $0x8] sm:$0xff]  ;;  %v1416_v1 = vld [vmem:[%s1799_s1 + $0x18] sm:$0xff]  ;;  %v1413_v2 = vld [vmem:[%s1799_s1] sm:$0xff] }
   0x2   :  { %145 = vmatpush.bf16.msra.mxu0 %v1414_v0  ;;  %161 = vmatpush.bf16.msra.mxu1 %v1414_v0  ;;  %v1415_v3 = vld [vmem:[%s1799_s1 + $0x10] sm:$0xff]  ;;  %v1564_v4 = vld [vmem:[%s1798_s0] sm:$0xf]  ;;  %v1569_v5 = vld [vmem:[%s1798_s0 + $0x4] sm:$0xf] }
   0x3   :  { %186 = vmatpush.bf16.msra.mxu2 %v1416_v1  ;;  %199 = vmatpush.bf16.msra.mxu3 %v1416_v1  ;;  %v1418_v6 = vld [vmem:[%s1799_s1 + $0x28] sm:$0xff]  ;;  %v1420_v7 = vld [vmem:[%s1799_s1 + $0x38] sm:$0xff]  ;;  %v1417_v8 = vld [vmem:[%s1799_s1 + $0x20] sm:$0xff] }
   0x4   :  { %v1422_v9 = vld [vmem:[%s1799_s1 + $0x48] sm:$0xff] }
   0x6   :  { %146 = vmatpush.bf16.msra.mxu0 %v1413_v2  ;;  %162 = vmatpush.bf16.msra.mxu1 %v1413_v2 }
   0x7   :  { %187 = vmatpush.bf16.msra.mxu2 %v1415_v3  ;;  %200 = vmatpush.bf16.msra.mxu3 %v1415_v3 }
   0x9   :  { %1269 = vmatmul.msk.bf16.vlgmr.msra.gmra.mxu0 %vm135_vm0, %v1564_v4  ;;  %1270 = vmatmul.msk.bf16.vlgmr.msra.gmra.mxu1 %vm135_vm0, %v1569_v5 }
   0xa   :  { %224 = vmatpush.bf16.msrb.mxu0 %v1418_v6  ;;  %237 = vmatpush.bf16.msrb.mxu1 %v1418_v6 }
   0xb   :  { %11 = vsyncpa [#allocation3], 0  ;;  %1279 = vmatmul.msk.bf16.vlgmr.msra.gmra.mxu2 %vm135_vm0, %v1564_v4  ;;  %1280 = vmatmul.msk.bf16.vlgmr.msra.gmra.mxu3 %vm135_vm0, %v1569_v5  ;;  %v1419_v10 = vld [vmem:[%s1799_s1 + $0x30] sm:$0xff]  ;;  %v1424_v11 = vld [vmem:[%s1799_s1 + $0x58] sm:$0xff]  ;;  %vm587_vm1 = vcmask 64512   ;;  %vm1083_vm2 = vcmask 1043456  }
   0xc   :  { %262 = vmatpush.bf16.msrb.mxu2 %v1420_v7  ;;  %275 = vmatpush.bf16.msrb.mxu3 %v1420_v7  ;;  %v1421_v12 = vld [vmem:[%s1799_s1 + $0x40] sm:$0xff]  ;;  %v1423_v13 = vld [vmem:[%s1799_s1 + $0x50] sm:$0xff]  ;;  %v1426_v14 = vld [vmem:[%s1799_s1 + $0x68] sm:$0xff]  ;;  %s1511_s29 = smov [#allocation2]   ;;  %s1249_s8 = sshll.u32 %s1804_s6, 4  ;;  %s1250_s8 = int_to_ptr.hbm [resolvable:$true] %s1249_s8 }
   0xd   :  { %v1428_v15 = vld [vmem:[%s1799_s1 + $0x78] sm:$0xff]  ;;  %v1425_v16 = vld [vmem:[%s1799_s1 + $0x60] sm:$0xff]  ;;  %v1427_v17 = vld [vmem:[%s1799_s1 + $0x70] sm:$0xff]  ;;  %s1247_s30 = sshll.u32 %s1511_s29, 4  ;;  %s1512_s9 = smov 128   ;;  %s1248_s30 = int_to_ptr.vmem [resolvable:$true] %s1247_s30 }
   0xe   :  { %225 = vmatpush.bf16.msrb.mxu0 %v1417_v8  ;;  %238 = vmatpush.bf16.msrb.mxu1 %v1417_v8  ;;  %v1430_v18 = vld [vmem:[%s1799_s1 + $0x88] sm:$0xff]  ;;  %v1432_v19 = vld [vmem:[%s1799_s1 + $0x98] sm:$0xff]  ;;  %v1431_v20 = vld [vmem:[%s1799_s1 + $0x90] sm:$0xff]  ;;  %s1513_s10 = smov 8  }
   0xf   :  { %v1429_v21 = vld [vmem:[%s1799_s1 + $0x80] sm:$0xff]  ;;  %v1436_v22 = vld [vmem:[%s1799_s1 + $0xb8] sm:$0xff]  ;;  %v1434_v23 = vld [vmem:[%s1799_s1 + $0xa8] sm:$0xff] }
  0x10   :  { %263 = vmatpush.bf16.msrb.mxu2 %v1419_v10  ;;  %276 = vmatpush.bf16.msrb.mxu3 %v1419_v10  ;;  %v1435_v24 = vld [vmem:[%s1799_s1 + $0xb0] sm:$0xff]  ;;  %v1433_v25 = vld [vmem:[%s1799_s1 + $0xa0] sm:$0xff] }
  0x11   :  { %v1444_v40 = vld [vmem:[%s1800_s2 + $0x4] ss:$0 sm:$0xff]  ;;  %v1440_v43 = vld [vmem:[%s1800_s2] ss:$0 sm:$0xff]  ;;  %v1445_v50 = vld [vmem:[%s1800_s2 + $0x5] ss:$0 sm:$0xff] }
  0x12   :  { %300 = vmatpush.bf16.msra.mxu0 %v1422_v9  ;;  %313 = vmatpush.bf16.msra.mxu1 %v1422_v9  ;;  %v1441_v51 = vld [vmem:[%s1800_s2 + $0x1] ss:$0 sm:$0xff]  ;;  %v1446_v60 = vld [vmem:[%s1800_s2 + $0x6] ss:$0 sm:$0xff]  ;;  %v1442_v63 = vld [vmem:[%s1800_s2 + $0x2] ss:$0 sm:$0xff] }
  0x13   :  { %v1447_v6 = vld [vmem:[%s1800_s2 + $0x7] ss:$0 sm:$0xff]  ;;  %v1443_v7 = vld [vmem:[%s1800_s2 + $0x3] ss:$0 sm:$0xff] }
  0x14   :  { %338 = vmatpush.bf16.msra.mxu2 %v1424_v11  ;;  %351 = vmatpush.bf16.msra.mxu3 %v1424_v11 }
  0x16   :  { %301 = vmatpush.bf16.msra.mxu0 %v1421_v12  ;;  %314 = vmatpush.bf16.msra.mxu1 %v1421_v12 }
  0x18   :  { %339 = vmatpush.bf16.msra.mxu2 %v1423_v13  ;;  %352 = vmatpush.bf16.msra.mxu3 %v1423_v13 }
  0x19   :  { %1289 = vmatmul.msk.bf16.vlgmr.msrb.gmra.mxu0 %vm135_vm0, %v1564_v4  ;;  %1290 = vmatmul.msk.bf16.vlgmr.msrb.gmra.mxu1 %vm135_vm0, %v1569_v5 }
  0x1a   :  { %376 = vmatpush.bf16.msrb.mxu0 %v1426_v14  ;;  %389 = vmatpush.bf16.msrb.mxu1 %v1426_v14 }
  0x1b   :  { %1299 = vmatmul.msk.bf16.vlgmr.msrb.gmra.mxu2 %vm135_vm0, %v1564_v4  ;;  %1300 = vmatmul.msk.bf16.vlgmr.msrb.gmra.mxu3 %vm135_vm0, %v1569_v5 }
  0x1c   :  { %414 = vmatpush.bf16.msrb.mxu2 %v1428_v15  ;;  %427 = vmatpush.bf16.msrb.mxu3 %v1428_v15 }
  0x1e   :  { %377 = vmatpush.bf16.msrb.mxu0 %v1425_v16  ;;  %390 = vmatpush.bf16.msrb.mxu1 %v1425_v16 }
  0x20   :  { %415 = vmatpush.bf16.msrb.mxu2 %v1427_v17  ;;  %428 = vmatpush.bf16.msrb.mxu3 %v1427_v17 }
  0x29   :  { %1309 = vmatmul.msk.bf16.vlgmr.msra.gmra.mxu0 %vm135_vm0, %v1564_v4  ;;  %1310 = vmatmul.msk.bf16.vlgmr.msra.gmra.mxu1 %vm135_vm0, %v1569_v5 }
  0x2a   :  { %452 = vmatpush.bf16.msra.mxu0 %v1430_v18  ;;  %465 = vmatpush.bf16.msra.mxu1 %v1430_v18  ;;  %v1448_v18 = vld [vmem:[%s1800_s2 + $0x8] ss:$0 sm:$0xff] }
  0x2b   :  { %1319 = vmatmul.msk.bf16.vlgmr.msra.gmra.mxu2 %vm135_vm0, %v1564_v4  ;;  %1320 = vmatmul.msk.bf16.vlgmr.msra.gmra.mxu3 %vm135_vm0, %v1569_v5 }
  0x2c   :  { %490 = vmatpush.bf16.msra.mxu2 %v1432_v19  ;;  %503 = vmatpush.bf16.msra.mxu3 %v1432_v19 }
  0x2e   :  { %453 = vmatpush.bf16.msra.mxu0 %v1429_v21  ;;  %466 = vmatpush.bf16.msra.mxu1 %v1429_v21 }
  0x30   :  { %491 = vmatpush.bf16.msra.mxu2 %v1431_v20  ;;  %504 = vmatpush.bf16.msra.mxu3 %v1431_v20 }
  0x39   :  { %1329 = vmatmul.msk.bf16.vlgmr.msrb.gmra.mxu0 %vm135_vm0, %v1564_v4  ;;  %1330 = vmatmul.msk.bf16.vlgmr.msrb.gmra.mxu1 %vm135_vm0, %v1569_v5 }
  0x3a   :  { %528 = vmatpush.bf16.msrb.mxu0 %v1434_v23  ;;  %541 = vmatpush.bf16.msrb.mxu1 %v1434_v23  ;;  %v1449_v23 = vld [vmem:[%s1800_s2 + $0x9] ss:$0 sm:$0xff] }
  0x3b   :  { %1339 = vmatmul.msk.bf16.vlgmr.msrb.gmra.mxu2 %vm135_vm0, %v1564_v4  ;;  %1340 = vmatmul.msk.bf16.vlgmr.msrb.gmra.mxu3 %vm135_vm0, %v1569_v5 }
  0x3c   :  { %566 = vmatpush.bf16.msrb.mxu2 %v1436_v22  ;;  %579 = vmatpush.bf16.msrb.mxu3 %v1436_v22 }
  0x3e   :  { %529 = vmatpush.bf16.msrb.mxu0 %v1433_v25  ;;  %542 = vmatpush.bf16.msrb.mxu1 %v1433_v25 }
  0x40   :  { %567 = vmatpush.bf16.msrb.mxu2 %v1435_v24  ;;  %580 = vmatpush.bf16.msrb.mxu3 %v1435_v24 }
  0x49   :  { %1349 = vmatmul.msk.bf16.vlgmr.msra.gmra.mxu0 %vm135_vm0, %v1564_v4  ;;  %1350 = vmatmul.msk.bf16.vlgmr.msra.gmra.mxu1 %vm135_vm0, %v1569_v5 }
  0x4b   :  { %1359 = vmatmul.msk.bf16.vlgmr.msra.gmra.mxu2 %vm135_vm0, %v1564_v4  ;;  %1360 = vmatmul.msk.bf16.vlgmr.msra.gmra.mxu3 %vm135_vm0, %v1569_v5 }
  0x59   :  { %1369 = vmatmul.msk.bf16.vlgmr.msrb.gmra.mxu0 %vm135_vm0, %v1564_v4  ;;  %1370 = vmatmul.msk.bf16.vlgmr.msrb.gmra.mxu1 %vm135_vm0, %v1569_v5 }
  0x5b   :  { %1379 = vmatmul.msk.bf16.vlgmr.msrb.gmra.mxu2 %vm135_vm0, %v1564_v4  ;;  %1380 = vmatmul.msk.bf16.vlgmr.msrb.gmra.mxu3 %vm135_vm0, %v1569_v5 }
  0x86   :  { %v148_v26 = vpop.f32.mrf.mxu0  ;;  %v164_v27 = vpop.f32.mrf.mxu1 }
  0x87   :  { %v149_v48 = vadd.f32 %v1440_v43, %v148_v26  ;;  %v165_v49 = vadd.f32 %v1440_v43, %v164_v27 }
  0x8e   :  { %v189_v28 = vpop.f32.mrf.mxu2  ;;  %v202_v29 = vpop.f32.mrf.mxu3 }
  0x8f   :  { %v150_v30 = vpop.f32.mrf.mxu0  ;;  %v166_v31 = vpop.f32.mrf.mxu1  ;;  %v190_v58 = vadd.f32 %v1441_v51, %v189_v28  ;;  %v203_v59 = vadd.f32 %v1441_v51, %v202_v29 }
  0x96   :  { %v191_v32 = vpop.f32.mrf.mxu2  ;;  %v204_v33 = vpop.f32.mrf.mxu3 }
  0x97   :  { %v227_v34 = vpop.f32.mrf.mxu0  ;;  %v240_v35 = vpop.f32.mrf.mxu1  ;;  %v1450_v32 = vld [vmem:[%s1800_s2 + $0xa] ss:$0 sm:$0xff] }
  0x98   :  { %v228_v4 = vadd.f32 %v1442_v63, %v227_v34  ;;  %v241_v5 = vadd.f32 %v1442_v63, %v240_v35 }
  0x9e   :  { %v265_v36 = vpop.f32.mrf.mxu2  ;;  %v278_v37 = vpop.f32.mrf.mxu3 }
  0x9f   :  { %v229_v38 = vpop.f32.mrf.mxu0  ;;  %v242_v39 = vpop.f32.mrf.mxu1  ;;  %v266_v14 = vadd.f32 %v1443_v7, %v265_v36  ;;  %v279_v15 = vadd.f32 %v1443_v7, %v278_v37  ;;  %v1451_v37 = vld [vmem:[%s1800_s2 + $0xb] ss:$0 sm:$0xff] }
  0xa6   :  { %v267_v41 = vpop.f32.mrf.mxu2  ;;  %v280_v42 = vpop.f32.mrf.mxu3 }
  0xa7   :  { %v303_v44 = vpop.f32.mrf.mxu0  ;;  %v316_v45 = vpop.f32.mrf.mxu1 }
  0xa8   :  { %v304_v46 = vadd.f32 %v1444_v40, %v303_v44  ;;  %v317_v47 = vadd.f32 %v1444_v40, %v316_v45 }
  0xaa   :  { %1381 = vmatpush.xpose.msk.msra.mxu0 %vm587_vm1, %v304_v46  ;;  %1383 = vmatpush.xpose.msk.msra.mxu1 %vm587_vm1, %v317_v47  ;;  %v586_v46 = vld [vmem:[%s1803_s5] sm:$0xff] }
  0xad   :  { %1382 = vmatmul.msk.f32.vlgmr.msra.gmra.mxu0 %vm587_vm1, %v149_v48  ;;  %1384 = vmatmul.msk.f32.vlgmr.msra.gmra.mxu1 %vm587_vm1, %v165_v49 }
  0xae   :  { %v341_v52 = vpop.f32.mrf.mxu2  ;;  %v354_v53 = vpop.f32.mrf.mxu3 }
  0xaf   :  { %v342_v54 = vadd.f32 %v1445_v50, %v341_v52  ;;  %v355_v55 = vadd.f32 %v1445_v50, %v354_v53  ;;  %v305_v56 = vpop.f32.mrf.mxu0  ;;  %v318_v57 = vpop.f32.mrf.mxu1 }
  0xb1   :  { %1385 = vmatpush.xpose.msk.msra.mxu2 %vm587_vm1, %v342_v54  ;;  %1387 = vmatpush.xpose.msk.msra.mxu3 %vm587_vm1, %v355_v55 }
  0xb4   :  { %1386 = vmatmul.msk.f32.vlgmr.msra.gmra.mxu2 %vm587_vm1, %v190_v58  ;;  %1388 = vmatmul.msk.f32.vlgmr.msra.gmra.mxu3 %vm587_vm1, %v203_v59 }
  0xb6   :  { %v343_v61 = vpop.f32.mrf.mxu2  ;;  %v356_v62 = vpop.f32.mrf.mxu3 }
  0xb7   :  { %v379_v0 = vpop.f32.mrf.mxu0  ;;  %v392_v1 = vpop.f32.mrf.mxu1 }
  0xb8   :  { %v380_v2 = vadd.f32 %v1446_v60, %v379_v0  ;;  %v393_v3 = vadd.f32 %v1446_v60, %v392_v1 }
  0xba   :  { %1389 = vmatpush.xpose.msk.msrb.mxu0 %vm587_vm1, %v380_v2  ;;  %1391 = vmatpush.xpose.msk.msrb.mxu1 %vm587_vm1, %v393_v3 }
  0xbd   :  { %1390 = vmatmul.msk.f32.vlgmr.msrb.gmra.mxu0 %vm587_vm1, %v228_v4  ;;  %1392 = vmatmul.msk.f32.vlgmr.msrb.gmra.mxu1 %vm587_vm1, %v241_v5 }
  0xbe   :  { %v417_v8 = vpop.f32.mrf.mxu2  ;;  %v430_v9 = vpop.f32.mrf.mxu3 }
  0xbf   :  { %v418_v10 = vadd.f32 %v1447_v6, %v417_v8  ;;  %v431_v11 = vadd.f32 %v1447_v6, %v430_v9  ;;  %v381_v12 = vpop.f32.mrf.mxu0  ;;  %v394_v13 = vpop.f32.mrf.mxu1 }
  0xc1   :  { %1393 = vmatpush.xpose.msk.msrb.mxu2 %vm587_vm1, %v418_v10  ;;  %1395 = vmatpush.xpose.msk.msrb.mxu3 %vm587_vm1, %v431_v11 }
  0xc4   :  { %1394 = vmatmul.msk.f32.vlgmr.msrb.gmra.mxu2 %vm587_vm1, %v266_v14  ;;  %1396 = vmatmul.msk.f32.vlgmr.msrb.gmra.mxu3 %vm587_vm1, %v279_v15 }
  0xc6   :  { %v419_v16 = vpop.f32.mrf.mxu2  ;;  %v432_v17 = vpop.f32.mrf.mxu3 }
  0xc7   :  { %v455_v19 = vpop.f32.mrf.mxu0  ;;  %v468_v20 = vpop.f32.mrf.mxu1 }
  0xc8   :  { %v456_v21 = vadd.f32 %v1448_v18, %v455_v19  ;;  %v469_v22 = vadd.f32 %v1448_v18, %v468_v20 }
  0xca   :  { %902 = vmatpush.msra.mxu0 %v456_v21  ;;  %925 = vmatpush.msra.mxu1 %v469_v22 }
  0xce   :  { %v493_v24 = vpop.f32.mrf.mxu2  ;;  %v506_v25 = vpop.f32.mrf.mxu3 }
  0xcf   :  { %v494_v26 = vadd.f32 %v1449_v23, %v493_v24  ;;  %v507_v27 = vadd.f32 %v1449_v23, %v506_v25  ;;  %v457_v28 = vpop.f32.mrf.mxu0  ;;  %v470_v29 = vpop.f32.mrf.mxu1 }
  0xd1   :  { %948 = vmatpush.msra.mxu2 %v494_v26  ;;  %971 = vmatpush.msra.mxu3 %v507_v27 }
  0xd6   :  { %v495_v30 = vpop.f32.mrf.mxu2  ;;  %v508_v31 = vpop.f32.mrf.mxu3 }
  0xd7   :  { %v531_v33 = vpop.f32.mrf.mxu0  ;;  %v544_v34 = vpop.f32.mrf.mxu1 }
  0xd8   :  { %v532_v35 = vadd.f32 %v1450_v32, %v531_v33  ;;  %v545_v36 = vadd.f32 %v1450_v32, %v544_v34 }
  0xda   :  { %994 = vmatpush.msrb.mxu0 %v532_v35  ;;  %1017 = vmatpush.msrb.mxu1 %v545_v36 }
  0xde   :  { %v569_v38 = vpop.f32.mrf.mxu2  ;;  %v582_v39 = vpop.f32.mrf.mxu3 }
  0xdf   :  { %v570_v40 = vadd.f32 %v1451_v37, %v569_v38  ;;  %v583_v41 = vadd.f32 %v1451_v37, %v582_v39  ;;  %v533_v42 = vpop.f32.mrf.mxu0  ;;  %v546_v43 = vpop.f32.mrf.mxu1 }
  0xe1   :  { %1040 = vmatpush.msrb.mxu2 %v570_v40  ;;  %1063 = vmatpush.msrb.mxu3 %v583_v41 }
  0xe6   :  { %v571_v44 = vpop.f32.mrf.mxu2  ;;  %v584_v45 = vpop.f32.mrf.mxu3 }
 0x12a   :  { %v611_v47 = vpop.f32.mrf.mxu0  ;;  %v637_v50 = vpop.f32.mrf.mxu1 }
 0x12b   :  { %v612_v48 = vadd.f32 %v611_v47, %v586_v46  ;;  %v638_v51 = vadd.f32 %v637_v50, %v586_v46 }
 0x12d   :  { %v796_v49 = vsel %vm587_vm1, %v612_v48, -inf  ;;  %v799_v52 = vsel %vm587_vm1, %v638_v51, -inf }
 0x12e   :  { %797 = vmax.xlane.f32.xlu1 %v796_v49 }
 0x136   :  { %800 = vmax.xlane.f32.xlu1 %v799_v52 }
 0x137   :  { %v663_v53 = vpop.f32.mrf.mxu2  ;;  %v689_v57 = vpop.f32.mrf.mxu3 }
 0x138   :  { %v664_v54 = vadd.f32 %v663_v53, %v586_v46  ;;  %v690_v60 = vadd.f32 %v689_v57, %v586_v46 }
 0x13a   :  { %v741_v55 = vpop.f32.mrf.mxu1  ;;  %v802_v56 = vsel %vm587_vm1, %v664_v54, -inf  ;;  %v805_v61 = vsel %vm587_vm1, %v690_v60, -inf  ;;  %v715_v62 = vpop.f32.mrf.mxu0 }
 0x13b   :  { %v742_v58 = vadd.f32 %v741_v55, %v586_v46  ;;  %803 = vmax.xlane.f32.xlu0 %v802_v56  ;;  %v716_v63 = vadd.f32 %v715_v62, %v586_v46 }
 0x13d   :  { %v811_v59 = vsel %vm587_vm1, %v742_v58, -inf  ;;  %v808_v3 = vsel %vm587_vm1, %v716_v63, -inf }
 0x13e   :  { %812 = vmax.xlane.f32.xlu1 %v811_v59 }
 0x143   :  { %806 = vmax.xlane.f32.xlu0 %v805_v61 }
 0x147   :  { %v767_v0 = vpop.f32.mrf.mxu2  ;;  %v793_v4 = vpop.f32.mrf.mxu3 }
 0x148   :  { %v768_v1 = vadd.f32 %v767_v0, %v586_v46  ;;  %v794_v5 = vadd.f32 %v793_v4, %v586_v46 }
 0x14a   :  { %v814_v2 = vsel %vm587_vm1, %v768_v1, -inf  ;;  %v817_v6 = vsel %vm587_vm1, %v794_v5, -inf }
 0x14b   :  { %815 = vmax.xlane.f32.xlu2 %v814_v2  ;;  %809 = vmax.xlane.f32.xlu0 %v808_v3 }
 0x153   :  { %818 = vmax.xlane.f32.xlu2 %v817_v6 }
 0x1a1   :  { %v798_v7 = vpop.xlane.xlu1 %797 }
 0x1a2   :  { %v820_v8 = vsub.f32 %v612_v48, %v798_v7  ;;  %v1068_v7 = vld [vmem:[%s1801_s3] sm:$0xf] }
 0x1a4   :  { %v828_v9 = vmul.f32 1.442695, %v820_v8  ;;  %v1085_v8 = vsel %vm1083_vm2, %v1068_v7, 0 }
 0x1a6   :  { %1453 = vpow2.f32 %v828_v9  ;;  %v1069_v9 = vld [vmem:[%s1801_s3 + $0x4] sm:$0xf] }
 0x1a9   :  { %v801_v12 = vpop.xlane.xlu1 %800 }
 0x1aa   :  { %v821_v15 = vsub.f32 %v638_v51, %v801_v12 }
 0x1ac   :  { %v1454_v10 = vpop.eup %1453  ;;  %v830_v17 = vmul.f32 1.442695, %v821_v15  ;;  %v1071_v15 = vld [vmem:[%s1801_s3 + $0xc] sm:$0xf] }
 0x1ad   :  { %v844_v11 = vsel %vm587_vm1, %v1454_v10, 0.0 }
 0x1ae   :  { %v804_v13 = vpop.xlane.xlu0 %803  ;;  %845 = vadd.xlane.f32.xlu1 %v844_v11  ;;  %v1070_v11 = vld [vmem:[%s1801_s3 + $0x8] sm:$0xf] }
 0x1af   :  { %v822_v14 = vsub.f32 %v664_v54, %v804_v13  ;;  %v1155_v12 = vsel %vm1083_vm2, %v1070_v11, 0 }
 0x1b1   :  { %v832_v16 = vmul.f32 1.442695, %v822_v14  ;;  %v813_v23 = vpop.xlane.xlu1 %812 }
 0x1b2   :  { %v825_v30 = vsub.f32 %v742_v58, %v813_v23 }
 0x1b3   :  { %1455 = vpow2.f32 %v832_v16  ;;  %v1190_v16 = vsel %vm1083_vm2, %v1071_v15, 0 }
 0x1b4   :  { %1457 = vpow2.f32 %v830_v17  ;;  %v838_v35 = vmul.f32 1.442695, %v825_v30 }
 0x1b6   :  { %v807_v18 = vpop.xlane.xlu0 %806 }
 0x1b7   :  { %v823_v19 = vsub.f32 %v690_v60, %v807_v18 }
 0x1b9   :  { %v1456_v20 = vpop.eup %1455  ;;  %v834_v21 = vmul.f32 1.442695, %v823_v19 }
 0x1ba   :  { %v850_v22 = vsel %vm587_vm1, %v1456_v20, 0.0  ;;  %v1458_v26 = vpop.eup %1457 }
 0x1bb   :  { %1459 = vpow2.f32 %v834_v21  ;;  %851 = vadd.xlane.f32.xlu2 %v850_v22  ;;  %v847_v34 = vsel %vm587_vm1, %v1458_v26, 0.0 }
 0x1be   :  { %v816_v24 = vpop.xlane.xlu2 %815  ;;  %v810_v25 = vpop.xlane.xlu0 %809 }
 0x1bf   :  { %v826_v27 = vsub.f32 %v768_v1, %v816_v24  ;;  %v824_v28 = vsub.f32 %v716_v63, %v810_v25 }
 0x1c1   :  { %v1460_v29 = vpop.eup %1459  ;;  %v840_v31 = vmul.f32 1.442695, %v826_v27  ;;  %v836_v32 = vmul.f32 1.442695, %v824_v28 }
 0x1c2   :  { %v853_v33 = vsel %vm587_vm1, %v1460_v29, 0.0 }
 0x1c3   :  { %1461 = vpow2.f32 %v840_v31  ;;  %854 = vadd.xlane.f32.xlu0 %v853_v33  ;;  %848 = vadd.xlane.f32.xlu2 %v847_v34 }
 0x1c4   :  { %1463 = vpow2.f32 %v836_v32 }
 0x1c5   :  { %1465 = vpow2.f32 %v838_v35 }
 0x1c6   :  { %v819_v36 = vpop.xlane.xlu2 %818 }
 0x1c7   :  { %v827_v37 = vsub.f32 %v794_v5, %v819_v36 }
 0x1c9   :  { %v1462_v38 = vpop.eup %1461  ;;  %v842_v39 = vmul.f32 1.442695, %v827_v37 }
 0x1ca   :  { %v1464_v40 = vpop.eup %1463  ;;  %v862_v41 = vsel %vm587_vm1, %v1462_v38, 0.0 }
 0x1cb   :  { %1467 = vpow2.f32 %v842_v39  ;;  %863 = vadd.xlane.f32.xlu0 %v862_v41  ;;  %v856_v42 = vsel %vm587_vm1, %v1464_v40, 0.0  ;;  %v1466_v43 = vpop.eup %1465 }
 0x1cc   :  { %857 = vadd.xlane.f32.xlu2 %v856_v42  ;;  %v859_v46 = vsel %vm587_vm1, %v1466_v43, 0.0 }
 0x1d1   :  { %v1468_v44 = vpop.eup %1467 }
 0x1d2   :  { %v865_v45 = vsel %vm587_vm1, %v1468_v44, 0.0 }
 0x1d3   :  { %866 = vadd.xlane.f32.xlu1 %v865_v45  ;;  %860 = vadd.xlane.f32.xlu0 %v859_v46 }
 0x221   :  { %v846_v47 = vpop.xlane.xlu1 %845 }
 0x222   :  { %1469 = vrcp.f32 %v846_v47 }
 0x228   :  { %v1470_v48 = vpop.eup %1469 }
 0x229   :  { %v876_v49 = vmul.f32 %v1470_v48, %v1454_v10  ;;  %v1120_v10 = vsel %vm1083_vm2, %v1069_v9, 0  ;;  %v1452_v48 = vld [vmem:[%s1802_s4] ss:$0 sm:$0xff] }
 0x22b   :  { %1397 = vmatmul.msk.f32.vlgmr.msra.gmra.mxu0 %vm587_vm1, %v876_v49 }
 0x22c   :  { %1094 = vmatpush.bf16.msra.mxu0 %v1085_v8 }
 0x22e   :  { %v852_v50 = vpop.xlane.xlu2 %851 }
 0x22f   :  { %1471 = vrcp.f32 %v852_v50 }
 0x235   :  { %v1472_v51 = vpop.eup %1471 }
 0x236   :  { %v878_v52 = vmul.f32 %v1472_v51, %v1456_v20  ;;  %v855_v53 = vpop.xlane.xlu0 %854  ;;  %v849_v54 = vpop.xlane.xlu2 %848 }
 0x237   :  { %1473 = vrcp.f32 %v855_v53 }
 0x238   :  { %1475 = vrcp.f32 %v849_v54  ;;  %1399 = vmatmul.msk.f32.vlgmr.msra.gmra.mxu2 %vm587_vm1, %v878_v52 }
 0x239   :  { %1129 = vmatpush.bf16.msra.mxu2 %v1120_v10 }
 0x23d   :  { %v1474_v55 = vpop.eup %1473 }
 0x23e   :  { %v1476_v56 = vpop.eup %1475  ;;  %v879_v57 = vmul.f32 %v1474_v55, %v1460_v29  ;;  %v864_v58 = vpop.xlane.xlu0 %863 }
 0x23f   :  { %v877_v59 = vmul.f32 %v1476_v56, %v1458_v26  ;;  %1477 = vrcp.f32 %v864_v58  ;;  %v858_v60 = vpop.xlane.xlu2 %857 }
 0x240   :  { %1479 = vrcp.f32 %v858_v60  ;;  %1400 = vmatmul.msk.f32.vlgmr.msra.gmra.mxu3 %vm587_vm1, %v879_v57 }
 0x241   :  { %1398 = vmatmul.msk.f32.vlgmr.msra.gmra.mxu1 %vm587_vm1, %v877_v59  ;;  %1145 = vmatpush.bf16.msra.mxu3 %v1120_v10 }
 0x242   :  { %1110 = vmatpush.bf16.msra.mxu1 %v1085_v8 }
 0x245   :  { %v1478_v61 = vpop.eup %1477 }
 0x246   :  { %v1480_v62 = vpop.eup %1479  ;;  %v882_v63 = vmul.f32 %v1478_v61, %v1462_v38  ;;  %v861_v0 = vpop.xlane.xlu0 %860 }
 0x247   :  { %v867_v1 = vpop.xlane.xlu1 %866  ;;  %v880_v2 = vmul.f32 %v1480_v62, %v1464_v40  ;;  %1481 = vrcp.f32 %v861_v0 }
 0x248   :  { %1483 = vrcp.f32 %v867_v1  ;;  %1403 = vmatmul.msk.f32.vlgmr.msrb.gmra.mxu2 %vm587_vm1, %v882_v63 }
 0x249   :  { %1401 = vmatmul.msk.f32.vlgmr.msrb.gmra.mxu0 %vm587_vm1, %v880_v2  ;;  %1199 = vmatpush.bf16.msrb.mxu2 %v1190_v16 }
 0x24a   :  { %1164 = vmatpush.bf16.msrb.mxu0 %v1155_v12 }
 0x24d   :  { %v1482_v3 = vpop.eup %1481 }
 0x24e   :  { %v1484_v4 = vpop.eup %1483  ;;  %v881_v5 = vmul.f32 %v1482_v3, %v1466_v43 }
 0x24f   :  { %v883_v6 = vmul.f32 %v1484_v4, %v1468_v44 }
 0x250   :  { %1402 = vmatmul.msk.f32.vlgmr.msrb.gmra.mxu1 %vm587_vm1, %v881_v5 }
 0x251   :  { %1404 = vmatmul.msk.f32.vlgmr.msrb.gmra.mxu3 %vm587_vm1, %v883_v6  ;;  %1180 = vmatpush.bf16.msrb.mxu1 %v1155_v12 }
 0x252   :  { %1215 = vmatpush.bf16.msrb.mxu3 %v1190_v16 }
 0x2a8   :  { %v904_v13 = vpop.f32.mrf.mxu0 }
 0x2a9   :  { %v1072_v14 = vpack.c.bf16 %v904_v13, %v904_v13 }
 0x2ab   :  { %1405 = vmatmul.msk.bf16.vlgmr.msra.gmra.mxu0 %vm587_vm1, %v1072_v14 }
 0x2bb   :  { %v950_v17 = vpop.f32.mrf.mxu2 }
 0x2bc   :  { %v1074_v18 = vpack.c.bf16 %v950_v17, %v950_v17 }
 0x2be   :  { %v927_v19 = vpop.f32.mrf.mxu1  ;;  %1407 = vmatmul.msk.bf16.vlgmr.msra.gmra.mxu2 %vm587_vm1, %v1074_v18 }
 0x2bf   :  { %v1073_v20 = vpack.c.bf16 %v927_v19, %v927_v19 }
 0x2c1   :  { %1406 = vmatmul.msk.bf16.vlgmr.msra.gmra.mxu1 %vm587_vm1, %v1073_v20 }
 0x2c3   :  { %v973_v21 = vpop.f32.mrf.mxu3 }
 0x2c4   :  { %v1075_v22 = vpack.c.bf16 %v973_v21, %v973_v21 }
 0x2c6   :  { %v996_v23 = vpop.f32.mrf.mxu0  ;;  %1408 = vmatmul.msk.bf16.vlgmr.msra.gmra.mxu3 %vm587_vm1, %v1075_v22 }
 0x2c7   :  { %v1076_v24 = vpack.c.bf16 %v996_v23, %v996_v23 }
 0x2c9   :  { %1409 = vmatmul.msk.bf16.vlgmr.msrb.gmra.mxu0 %vm587_vm1, %v1076_v24 }
 0x2cb   :  { %v1042_v25 = vpop.f32.mrf.mxu2 }
 0x2cc   :  { %v1078_v26 = vpack.c.bf16 %v1042_v25, %v1042_v25 }
 0x2cd   :  { %v1019_v27 = vpop.f32.mrf.mxu1 }
 0x2ce   :  { %v1077_v28 = vpack.c.bf16 %v1019_v27, %v1019_v27  ;;  %1411 = vmatmul.msk.bf16.vlgmr.msrb.gmra.mxu2 %vm587_vm1, %v1078_v26 }
 0x2d1   :  { %1410 = vmatmul.msk.bf16.vlgmr.msrb.gmra.mxu1 %vm587_vm1, %v1077_v28 }
 0x2d4   :  { %v1065_v29 = vpop.f32.mrf.mxu3 }
 0x2d5   :  { %v1079_v30 = vpack.c.bf16 %v1065_v29, %v1065_v29 }
 0x2d7   :  { %1412 = vmatmul.msk.bf16.vlgmr.msrb.gmra.mxu3 %vm587_vm1, %v1079_v30 }
 0x328   :  { %v1096_v31 = vpop.f32.mrf.mxu0 }
 0x329   :  { %v1221_v40 = vsel %vm135_vm0, %v1096_v31, 0.0 }
 0x330   :  { %v1098_v32 = vpop.f32.mrf.mxu0 }
 0x33e   :  { %v1112_v33 = vpop.f32.mrf.mxu1 }
 0x33f   :  { %v1228_v54 = vsel %vm135_vm0, %v1112_v33, 0.0 }
 0x341   :  { %v1131_v34 = vpop.f32.mrf.mxu2 }
 0x342   :  { %v1222_v39 = vsel %vm135_vm0, %v1131_v34, 0.0 }
 0x343   :  { %v1223_v44 = vadd.f32 %v1222_v39, %v1221_v40 }
 0x346   :  { %v1114_v35 = vpop.f32.mrf.mxu1  ;;  %v1166_v36 = vpop.f32.mrf.mxu0 }
 0x347   :  { %v1224_v41 = vsel %vm135_vm0, %v1166_v36, 0.0 }
 0x348   :  { %v1225_v45 = vadd.f32 %v1224_v41, %v1223_v44 }
 0x349   :  { %v1133_v37 = vpop.f32.mrf.mxu2  ;;  %v1147_v38 = vpop.f32.mrf.mxu3 }
 0x34a   :  { %v1229_v51 = vsel %vm135_vm0, %v1147_v38, 0.0 }
 0x34b   :  { %v1230_v56 = vadd.f32 %v1229_v51, %v1228_v54 }
 0x34e   :  { %v1168_v42 = vpop.f32.mrf.mxu0  ;;  %v1182_v43 = vpop.f32.mrf.mxu1 }
 0x34f   :  { %v1231_v55 = vsel %vm135_vm0, %v1182_v43, 0.0 }
 0x350   :  { %v1232_v58 = vadd.f32 %v1231_v55, %v1230_v56 }
 0x351   :  { %v1149_v46 = vpop.f32.mrf.mxu3  ;;  %v1201_v47 = vpop.f32.mrf.mxu2 }
 0x352   :  { %v1226_v49 = vsel %vm135_vm0, %v1201_v47, 0.0 }
 0x353   :  { %v1227_v50 = vadd.f32 %v1226_v49, %v1225_v45 }
 0x355   :  { %v1239_v52 = vadd.f32 %v1452_v48, %v1227_v50 }
 0x356   :  { %v1184_v53 = vpop.f32.mrf.mxu1 }
 0x357   :  { %1241 = vst.msk [vmem:[#allocation2] sm:$0xff] %vm135_vm0, %v1239_v52 }
 0x359   :  { %v1203_v57 = vpop.f32.mrf.mxu2 }
 0x35a   :  { %v1217_v59 = vpop.f32.mrf.mxu3 }
 0x35b   :  { %v1233_v60 = vsel %vm135_vm0, %v1217_v59, 0.0 }
 0x35c   :  { %v1234_v61 = vadd.f32 %v1233_v60, %v1232_v58 }
 0x35e   :  { %v1240_v62 = vadd.f32 %v1452_v48, %v1234_v61 }
 0x360   :  { %1242 = vst.msk [vmem:[#allocation2 + $0x8] sm:$0xff] %vm135_vm0, %v1240_v62 }
 0x361   :  { %1255 = dma.vmem_to_hbm [thread:$0]  %s1248_s30, 256, %s1250_s8, [#allocation3], %s1512_s9, %s1512_s9, %s1513_s10  }
 0x362   :  { %v1219_v63 = vpop.f32.mrf.mxu3 }
 0x363   :  { %1509 = dma.done.wait [#allocation3], 256  }
 0x364   :  { %1510 = vsyncadd [#allocation3], 4294967040 }
 0x365   :  { %1260 = vsyncpa [#allocation3], 1 }

</bundles_post_ra>
